<compile_context>
chip_gen: v7x
topology: tpu7x:2x2x1
jax: 0.10.0
libtpu: 0.0.40
codegen_flags: <defaults>
</compile_context>

<pallas_src>
import functools

import jax
import jax.numpy as jnp
from jax import lax
from jax.experimental import pallas as pl
from jax.experimental.pallas import tpu as pltpu

_LANE = 128
_SUBLANE = 8


def _round_up(x, m):
    return ((x + m - 1) // m) * m


def _round_down(x, m):
    return (x // m) * m


def _choose_tiling(batch, n_features, vmem_budget_bytes=24 << 20, max_rows=32768):
    """Pick (row_tile tb, in-kernel row chunk) from a per-step VMEM footprint model."""
    F = n_features

    # Row sub-chunk granularity for the in-kernel mul+reduce: power of two in
    # [8, 256], keeping the (chunk, F) f32 intermediates at <= ~1 MiB so they
    # stay in vregs / small scratch instead of tile-sized VMEM temps.
    g = _SUBLANE
    while g < 256 and (2 * g) * F * 4 <= (1 << 20):
        g *= 2

    # Per-step VMEM consumers (all f32):
    #   x   : 2 buffers * tb * F * 4
    #   out : (tb, 1) block pads to (tb, 128) lanes, double buffered
    #   w   : (1, F) pads to 8 sublanes, single un-pipelined whole-array buffer
    #   tmp : ~2 * chunk * F * 4 mul/reduce intermediates
    per_row = 2 * F * 4 + 2 * _LANE * 4
    fixed = _SUBLANE * _round_up(F, _LANE) * 4 + 2 * g * F * 4
    max_tb = max(g, _round_down(max(vmem_budget_bytes - fixed, 0) // per_row, g))
    # TODO(synk): for very large F (>~256K) add an F-reduction grid axis
    # ("arbitrary") with a scratch accumulator instead of shrinking row tiles.

    if batch <= g:
        tb = batch                      # full-dim block (legal for any size)
    else:
        tb = max(g, min(_round_down(batch, g), max_tb, max_rows))

    # v7x: if the whole batch fits one tile, split it so both TensorCores get a
    # grid step to stream HBM (grid axis is "parallel").
    if tb >= batch and batch >= 16:
        half = -(-batch // 2)           # cdiv(batch, 2)
        tb = min(batch, _round_up(half, g if batch > g else _SUBLANE))

    chunk = tb if tb <= g else g        # tb is a multiple of g when tb > g
    return tb, chunk


def _slr_kernel(x_ref, w_ref, b_ref, o_ref, *, chunk):
    # x_ref: (TB, F) VMEM tile; w_ref: (1, F) VMEM whole array (lane-dense);
    # b_ref: (1,) SMEM; o_ref: (TB, 1) VMEM tile.
    w = w_ref[...]                      # (1, F) f32, broadcast over rows
    b = b_ref[0]                        # scalar bias from SMEM
    tb = x_ref.shape[0]
    n_chunks = tb // chunk              # exact by construction

    def emit(r0):
        xc = x_ref[pl.ds(r0, chunk), :]                       # (chunk, F)
        acc = jnp.sum(xc * w, axis=-1, keepdims=True) + b     # VPU mul + lane reduce, f32
        o_ref[pl.ds(r0, chunk), :] = acc.astype(o_ref.dtype)

    if n_chunks == 1:
        emit(0)
    else:
        def body(c, carry):
            emit(pl.multiple_of(c * chunk, chunk))
            return carry
        lax.fori_loop(0, n_chunks, body, 0, unroll=(n_chunks <= 8))


@jax.jit
def slr_forward(x, weight, bias):
    """x: (B, F) f32; weight: (1, F) f32 (PyTorch nn.Linear layout); bias: (1,) f32."""
    B, F = x.shape
    tb, chunk = _choose_tiling(B, F)
    num_steps = pl.cdiv(B, tb)
    grid = (num_steps,)

    x_tile_bytes = tb * F * 4
    # Sub-MiB tiles can expose DMA issue latency under double buffering -> 3-deep.
    x_buffers = 3 if (x_tile_bytes < (1 << 20) and num_steps >= 3) else 2
    if x_buffers == 3:
        x_spec = pl.BlockSpec((tb, F), lambda i: (i, 0),
                              pipeline_mode=pl.Buffered(3))
    else:
        x_spec = pl.BlockSpec((tb, F), lambda i: (i, 0))

    est_vmem = (x_buffers * x_tile_bytes                 # pipelined x tiles
                + 2 * tb * _LANE * 4                     # lane-padded output tiles
                + _SUBLANE * _round_up(F, _LANE) * 4     # whole-array weight
                + 2 * chunk * F * 4)                     # in-kernel intermediates
    vmem_limit = int(min(64 << 20, max(32 << 20, est_vmem + (4 << 20))))

    cost = pl.CostEstimate(
        flops=2 * B * F,
        transcendentals=0,
        bytes_accessed=B * F * 4 + F * 4 + B * 4 + 4,
    )

    return pl.pallas_call(
        functools.partial(_slr_kernel, chunk=chunk),
        out_shape=jax.ShapeDtypeStruct((B, 1), x.dtype),
        grid_spec=pltpu.PrefetchScalarGridSpec(
            num_scalar_prefetch=0,
            grid=grid,
            in_specs=[
                # x: pipelined row tiles streamed from HBM
                x_spec,
                # weight: whole array resident in VMEM, no pipeline buffers
                pl.BlockSpec(memory_space=pltpu.MemorySpace.VMEM),
                # bias: single scalar in SMEM
                pl.BlockSpec(memory_space=pltpu.MemorySpace.SMEM),
            ],
            out_specs=pl.BlockSpec((tb, 1), lambda i: (i, 0)),
        ),
        compiler_params=pltpu.CompilerParams(
            dimension_semantics=("parallel",),   # independent row tiles -> both v7x TCs
            vmem_limit_bytes=vmem_limit,
        ),
        cost_estimate=cost,
    )(x, weight, bias)


if __name__ == "__main__":
    key = jax.random.PRNGKey(0)
    kx, kw, kb = jax.random.split(key, 3)

    batch, n_features = 8, 32
    x = jax.random.normal(kx, (batch, n_features), dtype=jnp.float32)

    # Deterministic parameter init (mimics nn.Linear uniform(-1/sqrt(F), 1/sqrt(F)))
    bound = 1.0 / jnp.sqrt(jnp.float32(n_features))
    weight = jax.random.uniform(kw, (1, n_features), minval=-bound, maxval=bound,
                                dtype=jnp.float32)
    bias = jax.random.uniform(kb, (1,), minval=-bound, maxval=bound,
                              dtype=jnp.float32)

    out = slr_forward(x, weight, bias)
    out = jax.block_until_ready(out)

    # Reference check against plain JAX (same semantics as nn.Linear forward)
    ref = x @ weight.T + bias
    assert out.shape == (batch, 1), out.shape
    assert jnp.allclose(out, ref, atol=1e-5, rtol=1e-5), "mismatch vs reference"

    print("KERNEL_OK")
</pallas_src>

<mosaic_0001>
module attributes {stable_mosaic.version = 11 : i64} {
  func.func @_slr_kernel(%arg0: i32, %arg1: memref<8x32xf32, #tpu.memory_space<vmem>>, %arg2: memref<1x32xf32, #tpu.memory_space<vmem>>, %arg3: memref<1xf32, #tpu.memory_space<smem>>, %arg4: memref<8x1xf32, #tpu.memory_space<vmem>>) attributes {dimension_semantics = [#tpu.dimension_semantics<parallel>], iteration_bounds = array<i64: 1>, scalar_prefetch = 0 : i64, scratch_operands = 0 : i64, tpu.core_type = #tpu.core_type<tc>, window_params = [{transform_indices = @transform_0, window_bounds = array<i64: 8, 32>}, {pipeline_mode = #tpu.pipeline_mode<synchronous>, transform_indices = @transform_1, window_bounds = array<i64: 1, 32>}, {transform_indices = @transform_2, window_bounds = array<i64: 1>}, {transform_indices = @transform_3, window_bounds = array<i64: 8, 1>}]} {
    %c0 = arith.constant 0 : index
    %c0_0 = arith.constant 0 : index
    %0 = vector.load %arg2[%c0, %c0_0] : memref<1x32xf32, #tpu.memory_space<vmem>>, vector<1x32xf32>
    %c0_1 = arith.constant 0 : index
    %1 = memref.load %arg3[%c0_1] : memref<1xf32, #tpu.memory_space<smem>>
    %c0_2 = arith.constant 0 : index
    %c0_3 = arith.constant 0 : index
    %2 = vector.load %arg1[%c0_2, %c0_3] : memref<8x32xf32, #tpu.memory_space<vmem>>, vector<8x32xf32>
    %3 = vector.broadcast %0 : vector<1x32xf32> to vector<8x32xf32>
    %4 = arith.mulf %2, %3 : vector<8x32xf32>
    %cst = arith.constant dense<0.000000e+00> : vector<8xf32>
    %5 = vector.multi_reduction <add>, %4, %cst [1] : vector<8x32xf32> to vector<8xf32>
    %6 = vector.shape_cast %5 : vector<8xf32> to vector<8x1xf32>
    %7 = vector.broadcast %1 : f32 to vector<8x1xf32>
    %8 = arith.addf %6, %7 : vector<8x1xf32>
    %c0_4 = arith.constant 0 : index
    %c0_5 = arith.constant 0 : index
    %9 = vector.load %arg4[%c0_4, %c0_5] : memref<8x1xf32, #tpu.memory_space<vmem>>, vector<8x1xf32>
    tpu.vector_store %arg4[%c0_4, %c0_5], %8 {strides = array<i32>} : memref<8x1xf32, #tpu.memory_space<vmem>>, vector<8x1xf32>,
    return
  }
  func.func @transform_0(%arg0: i32) -> (i32, i32) {
    %c0_i32 = arith.constant 0 : i32
    %c0_i32_0 = arith.constant 0 : i32
    return %arg0, %c0_i32 : i32, i32
  }
  func.func @transform_1(%arg0: i32) -> (i32, i32) {
    %c0_i32 = arith.constant 0 : i32
    %c0_i32_0 = arith.constant 0 : i32
    %c0_i32_1 = arith.constant 0 : i32
    return %c0_i32, %c0_i32_0 : i32, i32
  }
  func.func @transform_2(%arg0: i32) -> i32 {
    %c0_i32 = arith.constant 0 : i32
    %c0_i32_0 = arith.constant 0 : i32
    return %c0_i32 : i32
  }
  func.func @transform_3(%arg0: i32) -> (i32, i32) {
    %c0_i32 = arith.constant 0 : i32
    %c0_i32_0 = arith.constant 0 : i32
    return %arg0, %c0_i32 : i32, i32
  }
}

</mosaic_0001>

<bundles_post_ra>
// kernel: slr_forward.1
= control target key start
LH: loop header
LB: loop body
LE: loop exit
PB: predicated region body
PF: predicated region fallthrough
CT: control target
= control target key end

     0   :  { %9 = vsyncpa [#allocation4], 0  ;;  %s76_s12 = smov [#allocation3]   ;;  %s118_s0 = inlined_call_operand.hbm [shape: f32[8,32], index: 0, kind: input, shape index: {}]   ;;  %s119_s1 = inlined_call_operand.vmem [shape: f32[1,32], index: 1, kind: input, shape index: {}]   ;;  %s120_s2 = inlined_call_operand.<no memory space> [shape: f32[1], index: 2, kind: input, shape index: {}]   ;;  %s121_s3 = inlined_call_operand.vmem [shape: f32[8,1], index: 3, kind: output, shape index: {}]  }
   0x1   :  { %s16_s13 = sshll.u32 %s76_s12, 4  ;;  %s52_s16 = scalar_lea.hbm %s118_s0, 128  ;;  %s17_s13 = int_to_ptr.vmem [resolvable:$true] %s16_s13 }
   0x2   :  { %p53_p0 = scmp.ne.s32.totalorder %s118_s0, %s52_s16  ;;  %p56_p1 = scmp.lt.u32.totalorder %s52_s16, %s118_s0 }
   0x4   :  { %p58_p2 = pnand %p56_p1, %p53_p0 }
   0x6   :  { %61 = shalt.err (!%p58_p2)
}
   0x7   :  { %s62_s21 = scalar_lea.vmem %s17_s13, 128  ;;  %p67_p4 = scmp.lt.s32.totalorder %s17_s13, %s17_s13 }
   0x8   :  { %p63_p3 = scmp.ne.s32.totalorder %s17_s13, %s62_s21  ;;  %p68_p5 = scmp.lt.s32.totalorder %s62_s21, %s62_s21 }
   0xa   :  { %p69_p6 = por %p68_p5, %p67_p4 }
   0xc   :  { %p70_p7 = pnand %p69_p6, %p63_p3 }
   0xe   :  { %73 = shalt.err (!%p70_p7)
}
   0xf   :  { %19 = dma.hbm_to_vmem [thread:$0]  %s118_s0, 128, %s17_s13, [#allocation4]  }
  0x10   :  { %74 = dma.done.wait [#allocation4], 128  }
  0x11   :  { %75 = vsyncadd [#allocation4], 4294967168  ;;  %v50_v0 = vld [vmem:[%s119_s1] ss:$0 sm:$0xff]  ;;  %vm37_vm0 = vcmask 261120   ;;  %v41_v4 = vstv %s120_s2  ;;  %vm43_vm1 = vcmask 7168  }
  0x12   :  { %v29_v1 = vld [vmem:[#allocation3] sm:$0xff] }
  0x13   :  { %v36_v2 = vmul.f32 %v50_v0, %v29_v1 }
  0x15   :  { %v38_v3 = vsel %vm37_vm0, %v36_v2, 0.0 }
  0x16   :  { %39 = vadd.xlane.f32.xlu0 %v38_v3 }
  0xa3   :  { %v40_v5 = vpop.xlane.xlu0 %39 }
  0xa4   :  { %v42_v6 = vadd.f32 %v41_v4, %v40_v5 }
  0xa6   :  { %44 = vst.msk [vmem:[%s121_s3] sm:$0xff] %vm43_vm1, %v42_v6 }
  0xa7   :  { %49 = vsyncpa [#allocation4], 1 }

</bundles_post_ra>
